<compile_context>
chip_gen: v5e
topology: v5e:2x2
jax: 0.10.0
libtpu: 0.0.40
codegen_flags: <defaults>
</compile_context>

<pallas_src>
import jax
import jax.numpy as jnp
from jax.experimental import pallas as pl
from jax.experimental.pallas import tpu as pltpu


def _conv1x1_kernel(x_ref, w_ref, b_ref, o_ref):
    # x_ref: (Cin, tile_hw)  activation tile (lane dim = spatial -> dense stores)
    # w_ref: (Cout, Cin)     resident weight (constant index_map -> DMA'd once)
    # b_ref: (Cout, 1)       resident bias, broadcast over lanes on the VPU
    acc = jnp.dot(w_ref[...], x_ref[...], preferred_element_type=jnp.float32)
    o_ref[...] = (acc + b_ref[...]).astype(o_ref.dtype)


def _pick_spatial_tiling(hw, cap=1024):
    """Return (padded_hw, tile_hw): tile is a multiple of 128 dividing padded_hw."""
    hw_pad = ((hw + 127) // 128) * 128
    tile = min(hw_pad, cap)
    while hw_pad % tile != 0:
        tile -= 128
    return hw_pad, tile


def conv1x1_nchw(x3, w, b, *, tile_cap=1024):
    """1x1 conv as W(Cout,Cin) @ X(Cin,HW) per image.

    x3: (B, Cin, HW)  NCHW activations with spatial dims flattened (reshape only).
    w : (Cout, Cin)
    b : (Cout,)
    returns: (B, Cout, HW)
    """
    B, Cin, HW = x3.shape
    Cout = w.shape[0]
    HWp, tile_hw = _pick_spatial_tiling(HW, tile_cap)
    if HWp != HW:
        # Pad the lane axis up to a multiple of 128 so every tile is lane-dense.
        x3 = jnp.pad(x3, ((0, 0), (0, 0), (0, HWp - HW)))
    grid = (B, HWp // tile_hw)

    out = pl.pallas_call(
        _conv1x1_kernel,
        out_shape=jax.ShapeDtypeStruct((B, Cout, HWp), x3.dtype),
        grid_spec=pltpu.PrefetchScalarGridSpec(
            num_scalar_prefetch=0,
            grid=grid,
            in_specs=[
                pl.BlockSpec((pl.Squeezed(), Cin, tile_hw),
                             lambda bi, j: (bi, 0, j)),
                pl.BlockSpec((Cout, Cin), lambda bi, j: (0, 0)),
                pl.BlockSpec((Cout, 1), lambda bi, j: (0, 0)),
            ],
            out_specs=pl.BlockSpec((pl.Squeezed(), Cout, tile_hw),
                                   lambda bi, j: (bi, 0, j)),
        ),
        compiler_params=pltpu.CompilerParams(
            dimension_semantics=("parallel", "parallel")),
    )(x3, w, b.reshape(Cout, 1))

    if HWp != HW:
        out = out[:, :, :HW]
    return out


class YOLOHeadPallas:
    """JAX/Pallas re-implementation of YOLOHead's forward pass."""

    def __init__(self, cfg, key):
        self.n_anch = cfg['model.yolo.num_anchor_per_level']
        self.n_cls = cfg['general.num_class']
        self.bb_param = cfg.get('general.bbox_param', 4)
        self.out_ch = (self.bb_param + 1 + self.n_cls) * self.n_anch
        self.params = []
        for ch in cfg['model.fpn.out_channels']:
            key, kw, kb = jax.random.split(key, 3)
            # Mirrors nn.Conv2d default init: uniform in +/- 1/sqrt(fan_in)
            bound = 1.0 / jnp.sqrt(float(ch))
            w = jax.random.uniform(kw, (self.out_ch, ch), jnp.float32, -bound, bound)
            b = jax.random.uniform(kb, (self.out_ch,), jnp.float32, -bound, bound)
            self.params.append((w, b))

    def __call__(self, features):
        nBp = self.bb_param
        K = nBp + 1 + self.n_cls
        all_level_preds = []
        # TODO(synk): all FPN levels could be fused into one pallas_call with
        # scalar-prefetched level offsets; kept per-level calls because the
        # Cin-padding/concat copies needed would offset the launch savings at
        # these sizes.
        for (w, b), P in zip(self.params, features):
            nB, nC, nH, nW = P.shape          # NCHW like PyTorch
            # NCHW -> (B, Cin, H*W): pure reshape, no transpose / extra HBM pass
            x3 = P.reshape(nB, nC, nH * nW)
            y = conv1x1_nchw(x3, w, b)                   # (B, Cout, HW), lane-dense
            y = y.reshape(nB, self.out_ch, nH, nW)       # == PyTorch conv output (NCHW)

            if self.n_anch > 1:
                p = y.reshape(nB, self.n_anch, K, nH, nW)
                raw = {
                    'bbox': jnp.transpose(p[:, :, 0:nBp], (0, 1, 3, 4, 2)),
                    'conf': jnp.transpose(p[:, :, nBp:nBp + 1], (0, 1, 3, 4, 2)),
                    'class': jnp.transpose(p[:, :, nBp + 1:], (0, 1, 3, 4, 2)),
                }
            else:
                raw = {
                    'bbox': jnp.transpose(y[:, 0:nBp], (0, 2, 3, 1)),
                    'conf': jnp.transpose(y[:, nBp:nBp + 1], (0, 2, 3, 1)),
                    'class': jnp.transpose(y[:, nBp + 1:], (0, 2, 3, 1)),
                }
            all_level_preds.append(raw)
        return all_level_preds


def _reference_level(P, w, b, n_anch, bb_param, n_cls):
    """Pure-JAX reference reproducing the PyTorch semantics exactly."""
    nB, nC, nH, nW = P.shape
    K = bb_param + 1 + n_cls
    preds = jnp.einsum('oc,bchw->bohw', w, P) + b[None, :, None, None]
    if n_anch > 1:
        preds = preds.reshape(nB, n_anch, K, nH, nW)
        return {
            'bbox': jnp.transpose(preds[:, :, 0:bb_param], (0, 1, 3, 4, 2)),
            'conf': jnp.transpose(preds[:, :, bb_param:bb_param + 1], (0, 1, 3, 4, 2)),
            'class': jnp.transpose(preds[:, :, bb_param + 1:], (0, 1, 3, 4, 2)),
        }
    else:
        return {
            'bbox': jnp.transpose(preds[:, 0:bb_param], (0, 2, 3, 1)),
            'conf': jnp.transpose(preds[:, bb_param:bb_param + 1], (0, 2, 3, 1)),
            'class': jnp.transpose(preds[:, bb_param + 1:], (0, 2, 3, 1)),
        }


def _check(head, features):
    outs = head(features)
    jax.block_until_ready(outs)
    ok = True
    for raw, P, (w, b) in zip(outs, features, head.params):
        ref = _reference_level(P, w, b, head.n_anch, head.bb_param, head.n_cls)
        for name in ('bbox', 'conf', 'class'):
            if raw[name].shape != ref[name].shape:
                ok = False
            if not jnp.allclose(raw[name], ref[name], atol=1e-4, rtol=1e-4):
                ok = False
    return ok


if __name__ == "__main__":
    key = jax.random.PRNGKey(0)

    # Multi-anchor config (n_anch > 1 branch).
    cfg = {
        'model.yolo.num_anchor_per_level': 3,
        'general.num_class': 4,
        'general.bbox_param': 4,
        'model.fpn.out_channels': [16, 32],
    }
    head = YOLOHeadPallas(cfg, key)
    k0, k1 = jax.random.split(jax.random.PRNGKey(1))
    features = [
        jax.random.normal(k0, (2, 16, 16, 16), jnp.float32),  # (B, C0, H0, W0)
        jax.random.normal(k1, (2, 32, 8, 8), jnp.float32),    # (B, C1, H1, W1)
    ]
    ok = _check(head, features)

    # Single-anchor config (n_anch == 1 branch).
    cfg1 = {
        'model.yolo.num_anchor_per_level': 1,
        'general.num_class': 2,
        'general.bbox_param': 4,
        'model.fpn.out_channels': [16],
    }
    head1 = YOLOHeadPallas(cfg1, jax.random.PRNGKey(2))
    features1 = [jax.random.normal(jax.random.PRNGKey(3), (2, 16, 8, 8), jnp.float32)]
    ok = ok and _check(head1, features1)

    assert ok, "Pallas YOLOHead output mismatch vs reference"
    print("KERNEL_OK")
</pallas_src>

<mosaic_0001>
module attributes {stable_mosaic.version = 11 : i64} {
  func.func @_conv1x1_kernel(%arg0: i32, %arg1: i32, %arg2: memref<1x16x256xf32, #tpu.memory_space<vmem>>, %arg3: memref<27x16xf32, #tpu.memory_space<vmem>>, %arg4: memref<27x1xf32, #tpu.memory_space<vmem>>, %arg5: memref<1x27x256xf32, #tpu.memory_space<vmem>>) attributes {dimension_semantics = [#tpu.dimension_semantics<parallel>, #tpu.dimension_semantics<parallel>], iteration_bounds = array<i64: 2, 1>, scalar_prefetch = 0 : i64, scratch_operands = 0 : i64, tpu.core_type = #tpu.core_type<tc>, window_params = [{transform_indices = @transform_0, window_bounds = array<i64: 1, 16, 256>}, {pipeline_mode = #tpu.pipeline_mode<synchronous>, transform_indices = @transform_1, window_bounds = array<i64: 27, 16>}, {pipeline_mode = #tpu.pipeline_mode<synchronous>, transform_indices = @transform_2, window_bounds = array<i64: 27, 1>}, {transform_indices = @transform_3, window_bounds = array<i64: 1, 27, 256>}]} {
    %c0 = arith.constant 0 : index
    %c0_0 = arith.constant 0 : index
    %0 = vector.load %arg3[%c0, %c0_0] : memref<27x16xf32, #tpu.memory_space<vmem>>, vector<27x16xf32>
    %c0_1 = arith.constant 0 : index
    %c0_2 = arith.constant 0 : index
    %c0_3 = arith.constant 0 : index
    %1 = vector.load %arg2[%c0_1, %c0_2, %c0_3] : memref<1x16x256xf32, #tpu.memory_space<vmem>>, vector<1x16x256xf32>
    %2 = vector.shape_cast %1 : vector<1x16x256xf32> to vector<16x256xf32>
    %cst = arith.constant dense<0.000000e+00> : vector<27x256xf32>
    %3 = tpu.matmul %0, %2, %cst {dimension_numbers = #tpu.dot_dimension_numbers<[1], [0], [0], [1], [0, 0, 1, 1], [], []>} : vector<27x16xf32>, vector<16x256xf32>, vector<27x256xf32> -> vector<27x256xf32>
    %c0_4 = arith.constant 0 : index
    %c0_5 = arith.constant 0 : index
    %4 = vector.load %arg4[%c0_4, %c0_5] : memref<27x1xf32, #tpu.memory_space<vmem>>, vector<27x1xf32>
    %5 = vector.broadcast %4 : vector<27x1xf32> to vector<27x256xf32>
    %6 = arith.addf %3, %5 : vector<27x256xf32>
    %c0_6 = arith.constant 0 : index
    %c0_7 = arith.constant 0 : index
    %c0_8 = arith.constant 0 : index
    %7 = vector.load %arg5[%c0_6, %c0_7, %c0_8] : memref<1x27x256xf32, #tpu.memory_space<vmem>>, vector<1x27x256xf32>
    %8 = vector.shape_cast %7 : vector<1x27x256xf32> to vector<27x256xf32>
    %9 = vector.shape_cast %6 : vector<27x256xf32> to vector<1x27x256xf32>
    tpu.vector_store %arg5[%c0_6, %c0_7, %c0_8], %9 {strides = array<i32>} : memref<1x27x256xf32, #tpu.memory_space<vmem>>, vector<1x27x256xf32>,
    return
  }
  func.func @transform_0(%arg0: i32, %arg1: i32) -> (i32, i32, i32) {
    %c0_i32 = arith.constant 0 : i32
    %c0_i32_0 = arith.constant 0 : i32
    return %arg0, %c0_i32, %arg1 : i32, i32, i32
  }
  func.func @transform_1(%arg0: i32, %arg1: i32) -> (i32, i32) {
    %c0_i32 = arith.constant 0 : i32
    %c0_i32_0 = arith.constant 0 : i32
    %c0_i32_1 = arith.constant 0 : i32
    return %c0_i32, %c0_i32_0 : i32, i32
  }
  func.func @transform_2(%arg0: i32, %arg1: i32) -> (i32, i32) {
    %c0_i32 = arith.constant 0 : i32
    %c0_i32_0 = arith.constant 0 : i32
    %c0_i32_1 = arith.constant 0 : i32
    return %c0_i32, %c0_i32_0 : i32, i32
  }
  func.func @transform_3(%arg0: i32, %arg1: i32) -> (i32, i32, i32) {
    %c0_i32 = arith.constant 0 : i32
    %c0_i32_0 = arith.constant 0 : i32
    return %arg0, %c0_i32, %arg1 : i32, i32, i32
  }
}

</mosaic_0001>

<bundles_post_ra>
// kernel: tpu_custom_call.1
= control target key start
LH: loop header
LB: loop body
LE: loop exit
PB: predicated region body
PF: predicated region fallthrough
CT: control target
= control target key end

     0   :  { %s505_s12 = smov 0   ;;  %s507_s13 = smov 0   ;;  %s574_s0 = inlined_call_operand.vmem [shape: f32[2,16,256], index: 0, kind: input, shape index: {}]   ;;  %s575_s1 = inlined_call_operand.vmem [shape: f32[27,16], index: 1, kind: input, shape index: {}]   ;;  %s576_s2 = inlined_call_operand.vmem [shape: f32[27,1], index: 2, kind: input, shape index: {}]   ;;  %s577_s3 = inlined_call_operand.vmem [shape: f32[2,27,256], index: 3, kind: output, shape index: {}]  }
   0x1   :  { %s509_s14 = smov 0  }
   0x2 LB: > { %s25_s15 = sadd.s32 1, %s478_s13  ;;  %p412_p0 = scmp.ge.s32.totalorder %s482_s14, 1  ;;  %s482_s14 = sphi %s509_s14, %s13_s14   ;;  %s478_s13 = sphi %s507_s13, %s579_s13   ;;  %s474_s12 = sphi %s505_s12, %s578_s12  }
   0x3   : > { %p27_p1 = scmp.ge.s32.totalorder %s25_s15, 2  ;;  %p158_p2 = scmp.lt.s32.totalorder %s482_s14, 3 }
   0x5   : > { %s581_s15 = smov (%p27_p1, %s25_s15), 0  ;;  %p159_p3 = pnand %p412_p0, %p158_p2 }
   0x6   : > { %p191_p4 = scmp.lt.s32.totalorder (!%p159_p3), %s474_s12, 1 }
   0x7   : > { %162 = sbr.rel (%p159_p3) target bundleno = 164 (0xa4), region = 32 }
   0xc   : > { %v484_v0 = vmov 0   ;;  %v220_v1 = vld [vmem:[%s576_s2 + $0x10] sm:$0xff]  ;;  %v218_v2 = vld [vmem:[%s576_s2] sm:$0xff]  ;;  %s583_s12 = smov (!%p191_p4, %s474_s12), 1  ;;  %vm242_vm0 = vcmask 130048   ;;  %v219_v10 = vld [vmem:[%s576_s2 + $0x8] sm:$0xff] }
   0xd   : > { %459 = vset.pattern.permute.xlu1 %v484_v0  ;;  %458 = vset.pattern.permute.xlu0 %v484_v0  ;;  %s427_s20 = sshll.u32 %s583_s12, 5  ;;  %v210_v7 = vld [vmem:[%s575_s1] sm:$0xff]  ;;  %v212_v8 = vld [vmem:[%s575_s1 + $0x10] sm:$0xff]  ;;  %v221_v9 = vld [vmem:[%s576_s2 + $0x18] sm:$0x7]  ;;  %s428_s9 = sshll.u32 %s583_s12, 6 }
   0xe   : > { %234 = vperm.xlu1 %459, %v220_v1   ;;  %224 = vperm.xlu0 %458, %v218_v2   ;;  %s198_s23 = scalar_lea.vmem %s574_s0, %s427_s20  ;;  %v211_v11 = vld [vmem:[%s575_s1 + $0x8] sm:$0xff]  ;;  %v213_v12 = vld [vmem:[%s575_s1 + $0x18] sm:$0x7]  ;;  %s208_s16 = scalar_lea.vmem %s577_s3, %s428_s9 }
   0xf   : > { %v216_v3 = vld [vmem:[%s198_s23 + $0x10] sm:$0xff]  ;;  %v217_v4 = vld [vmem:[%s198_s23 + $0x18] sm:$0xff]  ;;  %v214_v5 = vld [vmem:[%s198_s23] sm:$0xff] }
  0x10   : > { %269 = vmatpush.msra.mxu0 %v216_v3  ;;  %429 = vmatpush.msra.mxu2 %v216_v3  ;;  %v215_v6 = vld [vmem:[%s198_s23 + $0x8] sm:$0xff] }
  0x11   : > { %298 = vmatpush.msra.mxu1 %v217_v4  ;;  %431 = vmatpush.msra.mxu3 %v217_v4 }
  0x12   : > { %270 = vmatpush.msra.mxu0 %v214_v5  ;;  %430 = vmatpush.msra.mxu2 %v214_v5 }
  0x13   : > { %299 = vmatpush.msra.mxu1 %v215_v6  ;;  %432 = vmatpush.msra.mxu3 %v215_v6 }
  0x14   : > { %417 = vmatmul.msk.f32.vlgmr.msra.gmra.mxu0 %vm242_vm0, %v210_v7  ;;  %419 = vmatmul.msk.f32.vlgmr.msra.gmra.mxu2 %vm242_vm0, %v212_v8 }
  0x15   : > { %421 = vmatmul.msk.f32.vlgmr.msra.gmra.mxu1 %vm242_vm0, %v210_v7  ;;  %423 = vmatmul.msk.f32.vlgmr.msra.gmra.mxu3 %vm242_vm0, %v212_v8 }
  0x16   : > { %239 = vperm.xlu1 %459, %v221_v9   ;;  %229 = vperm.xlu0 %458, %v219_v10  }
  0x1c   : > { %418 = vmatmul.msk.f32.gmra.mxu0 %vm242_vm0, %v211_v11  ;;  %420 = vmatmul.msk.f32.gmra.mxu2 %vm242_vm0, %v213_v12 }
  0x1d   : > { %422 = vmatmul.msk.f32.gmra.mxu1 %vm242_vm0, %v211_v11  ;;  %424 = vmatmul.msk.f32.gmra.mxu3 %vm242_vm0, %v213_v12 }
  0x80   : > { %v225_v13 = vpop.permute.xlu0 %224  ;;  %v235_v18 = vpop.permute.xlu1 %234 }
  0x88   : > { %v230_v22 = vpop.permute.xlu0 %229  ;;  %v240_v28 = vpop.permute.xlu1 %239 }
  0x91   : > { %v272_v14 = vpop.f32.mrf.mxu0 }
  0x92   : > { %v273_v15 = vadd.f32 %v272_v14, %v225_v13  ;;  %v301_v16 = vpop.f32.mrf.mxu1 }
  0x93   : > { %v302_v17 = vadd.f32 %v301_v16, %v225_v13 }
  0x94   : > { %313 = vst [vmem:[%s208_s16] sm:$0xff] %v273_v15 }
  0x95   : > { %314 = vst [vmem:[%s208_s16 + $0x8] sm:$0xff] %v302_v17 }
  0x97   : > { %v278_v19 = vpop.f32.mrf.mxu2 }
  0x98   : > { %v279_v20 = vadd.f32 %v278_v19, %v235_v18  ;;  %v307_v21 = vpop.f32.mrf.mxu3 }
  0x99   : > { %v308_v23 = vadd.f32 %v307_v21, %v235_v18  ;;  %v275_v24 = vpop.f32.mrf.mxu0 }
  0x9a   : > { %317 = vst [vmem:[%s208_s16 + $0x20] sm:$0xff] %v279_v20  ;;  %v276_v25 = vadd.f32 %v275_v24, %v230_v22  ;;  %v304_v26 = vpop.f32.mrf.mxu1 }
  0x9b   : > { %318 = vst [vmem:[%s208_s16 + $0x28] sm:$0xff] %v308_v23  ;;  %v305_v27 = vadd.f32 %v304_v26, %v230_v22 }
  0x9c   : > { %315 = vst [vmem:[%s208_s16 + $0x10] sm:$0xff] %v276_v25 }
  0x9d   : > { %316 = vst [vmem:[%s208_s16 + $0x18] sm:$0xff] %v305_v27 }
  0x9f   : > { %v281_v29 = vpop.f32.mrf.mxu2 }
  0xa0   : > { %v282_v30 = vadd.f32 %v281_v29, %v240_v28  ;;  %v310_v31 = vpop.f32.mrf.mxu3 }
  0xa1   : > { %v311_v32 = vadd.f32 %v310_v31, %v240_v28 }
  0xa2   : > { %319 = vst [vmem:[%s208_s16 + $0x30] sm:$0x7] %v282_v30 }
  0xa3   : > { %320 = vst [vmem:[%s208_s16 + $0x38] sm:$0x7] %v311_v32 }
  0xa4 PF: > { %s13_s14 = sadd.s32 1, %s482_s14   ;;  %s578_s12 = smov %s478_s13 }
  0xa5   : > { %p10_p5 = scmp.ge.s32.totalorder %s13_s14, 4   ;;  %s579_s13 = smov %s581_s15 }
  0xa7   :  { %12 = sbr.rel (!%p10_p5) target bundleno = 2 (0x2), region = 62 }

</bundles_post_ra>
